<compile_context>
chip_gen: v6e
topology: v6e:2x2x1
jax: 0.10.0
libtpu: 0.0.40
codegen_flags: <defaults>
</compile_context>

<pallas_src>
from typing import NamedTuple

import jax
import jax.numpy as jnp
from jax.experimental import pallas as pl
from jax.experimental.pallas import tpu as pltpu

LANE = 128
SUB_ALIGN = 32  # covers f32(8) / bf16(16) / int8(32) sublane packing


def _round_up(x, m):
    return ((x + m - 1) // m) * m


class Meta(NamedTuple):
    D: int
    H: int
    A: int
    Hp: int        # hidden padded to 128 lanes
    Ap: int        # actions padded to 128 lanes
    Kg: int        # GRU matmul K (rows of packed GRU weight)
    Ng: int        # GRU matmul N (cols of packed GRU weight)
    small_k: bool  # [xr | h] packed into one 128-lane K block
    small_n: bool  # [r | z | i_n | h_n] packed into one 128-lane N block


# ---------------------------------------------------------------------------
# Kernel
# ---------------------------------------------------------------------------
def _make_kernel(meta, compute_dtype):
    H, Hp = meta.H, meta.Hp
    cd = compute_dtype

    def kernel(x_ref, h_ref, w1_ref, b1_ref, wg_ref, bg_ref, w2_ref, b2_ref,
               h_out_ref, act_ref):
        x = x_ref[...].astype(cd)                        # (TB, D)
        h = h_ref[...].astype(jnp.float32)               # (TB, Hp), pad lanes == 0

        # fc1 + ReLU (f32 MXU accumulation, f32 elementwise)
        xr = jnp.maximum(
            jnp.dot(x, w1_ref[...], preferred_element_type=jnp.float32)
            + b1_ref[...], 0.0)                          # (TB, Hp), pad lanes == 0

        # GRU gate projection -- no concat; layout was picked at pack time.
        if meta.small_k:
            # xr lives in lanes [0:H]; rotate h into lanes [H:2H] (XLU roll,
            # pad lanes are zero so nothing is polluted) -> one K=128 matmul.
            xh = (xr + pltpu.roll(h, H, 1)).astype(cd)   # (TB, 128)
            g = jnp.dot(xh, wg_ref[...],
                        preferred_element_type=jnp.float32) + bg_ref[...]
        else:
            # Two accumulating dots on row blocks of the packed weight: same
            # total MXU K work as a fused matmul, no (TB, 2*Hp) VMEM copy.
            g = (jnp.dot(xr.astype(cd), wg_ref[0:Hp, :],
                         preferred_element_type=jnp.float32)
                 + jnp.dot(h.astype(cd), wg_ref[Hp:2 * Hp, :],
                           preferred_element_type=jnp.float32)
                 + bg_ref[...])

        if meta.small_n:
            # Gates packed at lane offsets [0, H, 2H, 3H] of one 128-lane
            # block; realign with XLU rolls, only lanes [0:H] are meaningful.
            r = jax.nn.sigmoid(g)
            z = jax.nn.sigmoid(pltpu.roll(g, LANE - H, 1))
            n = jnp.tanh(pltpu.roll(g, LANE - 2 * H, 1)
                         + r * pltpu.roll(g, LANE - 3 * H, 1))
            h_new = (1.0 - z) * n + z * h
            lane = jax.lax.broadcasted_iota(jnp.int32, h_new.shape, 1)
            h_new = jnp.where(lane < H, h_new, 0.0)      # keep carry pad lanes 0
        else:
            # Gate blocks are Hp-wide and 128-lane aligned; wg/bg pad columns
            # are zero so h_new pad lanes come out exactly 0.
            r = jax.nn.sigmoid(g[:, 0 * Hp:1 * Hp])
            z = jax.nn.sigmoid(g[:, 1 * Hp:2 * Hp])
            n = jnp.tanh(g[:, 2 * Hp:3 * Hp] + r * g[:, 3 * Hp:4 * Hp])
            h_new = (1.0 - z) * n + z * h

        # fc2 + tanh (Ap lanes -> unmasked lane-dense store)
        act = jnp.tanh(jnp.dot(h_new.astype(cd), w2_ref[...],
                               preferred_element_type=jnp.float32) + b2_ref[...])

        h_out_ref[...] = h_new.astype(h_out_ref.dtype)
        act_ref[...] = act.astype(act_ref.dtype)

    return kernel


# ---------------------------------------------------------------------------
# Parameter packing (runs ONCE per parameter set -- hoisted out of the step)
# ---------------------------------------------------------------------------
def pack_params(p, *, compute_dtype=jnp.bfloat16):
    f32 = jnp.float32
    D, H = int(p["w1"].shape[0]), int(p["w_hh"].shape[0])
    A = int(p["w2"].shape[1])
    Hp, Ap = _round_up(H, LANE), _round_up(A, LANE)
    small_k = 2 * H <= LANE
    small_n = 4 * H <= LANE          # implies small_k

    w1 = jnp.zeros((D, Hp), f32).at[:, :H].set(p["w1"].astype(f32))
    b1 = jnp.zeros((1, Hp), f32).at[0, :H].set(p["b1"].astype(f32))

    wih, whh = p["w_ih"].astype(f32), p["w_hh"].astype(f32)
    bih, bhh = p["b_ih"].astype(f32), p["b_hh"].astype(f32)

    Kg = LANE if small_k else 2 * Hp
    Ng = LANE if small_n else 4 * Hp
    xr0, hr0 = 0, (H if small_k else Hp)            # row offsets for x / h parts
    col = (lambda k: k * H) if small_n else (lambda k: k * Hp)

    # Fused GRU weight. Column blocks: 0 -> r, 1 -> z, 2 -> i_n (x only),
    # 3 -> h_n (h only).  i_n / h_n kept separate so n = tanh(i_n + r*h_n)
    # matches torch.nn.GRUCell exactly.
    wg = jnp.zeros((Kg, Ng), f32)
    wg = wg.at[xr0:xr0 + H, col(0):col(0) + H].set(wih[:, 0:H])
    wg = wg.at[hr0:hr0 + H, col(0):col(0) + H].set(whh[:, 0:H])
    wg = wg.at[xr0:xr0 + H, col(1):col(1) + H].set(wih[:, H:2 * H])
    wg = wg.at[hr0:hr0 + H, col(1):col(1) + H].set(whh[:, H:2 * H])
    wg = wg.at[xr0:xr0 + H, col(2):col(2) + H].set(wih[:, 2 * H:3 * H])
    wg = wg.at[hr0:hr0 + H, col(3):col(3) + H].set(whh[:, 2 * H:3 * H])

    bg = jnp.zeros((1, Ng), f32)
    bg = bg.at[0, col(0):col(0) + H].set(bih[0:H] + bhh[0:H])
    bg = bg.at[0, col(1):col(1) + H].set(bih[H:2 * H] + bhh[H:2 * H])
    bg = bg.at[0, col(2):col(2) + H].set(bih[2 * H:3 * H])
    bg = bg.at[0, col(3):col(3) + H].set(bhh[2 * H:3 * H])

    w2 = jnp.zeros((Hp, Ap), f32).at[:H, :A].set(p["w2"].astype(f32))
    b2 = jnp.zeros((1, Ap), f32).at[0, :A].set(p["b2"].astype(f32))

    cd = compute_dtype
    packed = {
        "w1": w1.astype(cd), "b1": b1,       # biases stay f32 (added post-MXU)
        "w_gru": wg.astype(cd), "b_gru": bg,
        "w2": w2.astype(cd), "b2": b2,
    }
    meta = Meta(D=D, H=H, A=A, Hp=Hp, Ap=Ap, Kg=Kg, Ng=Ng,
                small_k=small_k, small_n=small_n)
    return packed, meta


# ---------------------------------------------------------------------------
# Capability probes / chip bookkeeping
# ---------------------------------------------------------------------------
_BUFFERED_OK = None


def _buffered_weights_supported():
    """Probe once whether BlockSpec(pipeline_mode=pl.Buffered(1)) works on this
    JAX/Mosaic build; resident weights are single-buffered only if it does."""
    global _BUFFERED_OK
    if _BUFFERED_OK is None:
        try:
            def probe_kernel(x_ref, w_ref, o_ref):
                o_ref[...] = x_ref[...] + w_ref[...]

            y = pl.pallas_call(
                probe_kernel,
                grid=(2,),
                in_specs=[pl.BlockSpec((8, LANE), lambda i: (i, 0)),
                          pl.BlockSpec((8, LANE), lambda i: (0, 0),
                                       pipeline_mode=pl.Buffered(1))],
                out_specs=pl.BlockSpec((8, LANE), lambda i: (i, 0)),
                out_shape=jax.ShapeDtypeStruct((16, LANE), jnp.float32),
            )(jnp.zeros((16, LANE), jnp.float32),
              jnp.ones((8, LANE), jnp.float32))
            _BUFFERED_OK = bool(jax.block_until_ready(jnp.all(y == 1.0)))
        except Exception:
            _BUFFERED_OK = False
    return _BUFFERED_OK


def _vmem_cap_bytes():
    """Per-chip clamp for vmem_limit_bytes: ~100 MiB on 128 MiB-VMEM chips
    (v4/v5e/v6e), conservative ~52 MiB otherwise (v7x-class has 64 MiB)."""
    try:
        kind = jax.devices()[0].device_kind.lower()
    except Exception:
        kind = ""
    if any(t in kind for t in ("v4", "v5", "v6")):
        return 100 << 20
    return 52 << 20


# ---------------------------------------------------------------------------
# Forward builder: pack once, return a jitted step function
# ---------------------------------------------------------------------------
def make_rnn_agent_forward(params, *, compute_dtype=jnp.bfloat16,
                           carry_dtype=jnp.bfloat16, act_dtype=jnp.bfloat16,
                           batch_tile=512, unpad_outputs=True):
    """Returns step(inputs (B, D), hidden_state (B, H) or (B, Hp)) -> dict.

    unpad_outputs=True  -> {'actions': (B, A) f32, 'hidden_state': (B, H) f32}
                           (module-exact interface; costs one slice per output).
    unpad_outputs=False -> lane-padded bf16 (B, Ap)/(B, Hp); the hidden state
                           can be fed straight back (fast rollout path, no
                           per-step pad/slice HBM round-trips).
    """
    packed, meta = pack_params(params, compute_dtype=compute_dtype)
    kernel = _make_kernel(meta, compute_dtype)
    use_buffered = _buffered_weights_supported()
    vmem_cap = _vmem_cap_bytes()

    weights = (packed["w1"], packed["b1"], packed["w_gru"], packed["b_gru"],
               packed["w2"], packed["b2"])
    resident_bytes = sum(int(w.size) * w.dtype.itemsize for w in weights)
    resident_bytes *= (1 if use_buffered else 2)
    # TODO(synk): for very large H on 64 MiB-VMEM chips, stream w_gru over an
    # extra "arbitrary" grid axis (K/N blocks + f32 accumulator) instead of
    # keeping it fully resident.

    cd_b = jnp.dtype(compute_dtype).itemsize
    ca_b = jnp.dtype(carry_dtype).itemsize
    ac_b = jnp.dtype(act_dtype).itemsize

    def _vmem_need(tb, x_bytes):
        # Double-buffered I/O tiles + in-kernel temporaries (xr, f32 h, g,
        # h_new, act) + resident weights + margin.
        io = tb * (meta.D * x_bytes + 2 * meta.Hp * ca_b + meta.Ap * ac_b)
        tmp = 4 * tb * (3 * meta.Hp + 2 * meta.Ng + meta.Ap) \
            + cd_b * tb * (meta.D + meta.Kg)
        return 2 * io + tmp + resident_bytes + (2 << 20)

    def _resident_spec(arr):
        nd = arr.ndim
        imap = lambda i, _nd=nd: (0,) * _nd
        if use_buffered:  # weights never change -> single buffer is enough
            return pl.BlockSpec(arr.shape, imap, pipeline_mode=pl.Buffered(1))
        return pl.BlockSpec(arr.shape, imap)

    def forward(inputs, hidden_state):
        if inputs.ndim != 2 or inputs.shape[1] != meta.D:
            raise ValueError(f"inputs must be (B, {meta.D}), got {inputs.shape}")
        B = inputs.shape[0]
        x_bytes = jnp.dtype(inputs.dtype).itemsize

        # Hidden state: accept (.., H) (padded once here) or the lane-padded
        # (.., Hp) carry produced by this kernel (fed back with no re-pack).
        h = hidden_state.reshape(-1, hidden_state.shape[-1])
        if h.shape[0] != B:
            raise ValueError("hidden_state batch does not match inputs")
        if h.shape[-1] == meta.Hp:
            h = h.astype(carry_dtype)
        elif h.shape[-1] == meta.H:
            if meta.Hp == meta.H:
                h = h.astype(carry_dtype)
            else:
                h = jnp.zeros((B, meta.Hp), carry_dtype).at[:, :meta.H].set(
                    h.astype(carry_dtype))
        else:
            raise ValueError("hidden_state width must be H or padded Hp")

        # Batch tile: amortize per-step overhead, keep >=2 grid steps for large
        # batches (2 TensorCores on v7x), stay inside the per-chip VMEM clamp.
        if B > 2 * SUB_ALIGN:
            tb = min(_round_up(batch_tile, SUB_ALIGN),
                     _round_up(-(-B // 2), SUB_ALIGN))
        else:
            tb = B
        while tb > SUB_ALIGN and _vmem_need(tb, x_bytes) > vmem_cap:
            tb = _round_up(tb // 2, SUB_ALIGN)

        if tb >= B:
            tb, bp = B, B              # single full-batch block, no padding
        else:
            bp = _round_up(B, tb)
        grid = (bp // tb,)

        x_in, h_in = inputs, h
        if bp > B:                     # pad the batch tail only when unavoidable
            x_in = jnp.zeros((bp, meta.D), inputs.dtype).at[:B].set(inputs)
            h_in = jnp.zeros((bp, meta.Hp), carry_dtype).at[:B].set(h)

        vmem_limit = int(min(max(_vmem_need(tb, x_bytes), 16 << 20), vmem_cap))

        in_specs = [pl.BlockSpec((tb, meta.D), lambda i: (i, 0)),
                    pl.BlockSpec((tb, meta.Hp), lambda i: (i, 0))]
        in_specs += [_resident_spec(w) for w in weights]
        out_specs = (pl.BlockSpec((tb, meta.Hp), lambda i: (i, 0)),
                     pl.BlockSpec((tb, meta.Ap), lambda i: (i, 0)))
        out_shape = (jax.ShapeDtypeStruct((bp, meta.Hp), carry_dtype),
                     jax.ShapeDtypeStruct((bp, meta.Ap), act_dtype))

        h_out, act = pl.pallas_call(
            kernel,
            out_shape=out_shape,
            grid_spec=pltpu.PrefetchScalarGridSpec(
                num_scalar_prefetch=0, grid=grid,
                in_specs=in_specs, out_specs=out_specs),
            compiler_params=pltpu.CompilerParams(
                dimension_semantics=("parallel",),
                vmem_limit_bytes=vmem_limit),
        )(x_in, h_in, *weights)

        if unpad_outputs:   # module-exact interface
            return {"actions": act[:B, :meta.A].astype(jnp.float32),
                    "hidden_state": h_out[:B, :meta.H].astype(jnp.float32)}
        return {"actions": act, "hidden_state": h_out}

    return jax.jit(forward)


# ---------------------------------------------------------------------------
# Parameters + pure-JAX reference (PyTorch GRUCell semantics, f32 carry)
# ---------------------------------------------------------------------------
def make_params(key, input_shape, hidden, dim_actions):
    ks = jax.random.split(key, 8)
    s = 0.1
    return {
        "w1": s * jax.random.normal(ks[0], (input_shape, hidden), jnp.float32),
        "b1": s * jax.random.normal(ks[1], (hidden,), jnp.float32),
        "w_ih": s * jax.random.normal(ks[2], (hidden, 3 * hidden), jnp.float32),
        "b_ih": s * jax.random.normal(ks[3], (3 * hidden,), jnp.float32),
        "w_hh": s * jax.random.normal(ks[4], (hidden, 3 * hidden), jnp.float32),
        "b_hh": s * jax.random.normal(ks[5], (3 * hidden,), jnp.float32),
        "w2": s * jax.random.normal(ks[6], (hidden, dim_actions), jnp.float32),
        "b2": s * jax.random.normal(ks[7], (dim_actions,), jnp.float32),
    }


def reference_forward(inputs, hidden_state, p, compute_dtype=jnp.bfloat16):
    cd = compute_dtype

    def mm(a, w):
        return jnp.dot(a.astype(cd), w.astype(cd), preferred_element_type=jnp.float32)

    h = hidden_state.reshape(-1, p["w_hh"].shape[0]).astype(jnp.float32)
    H = h.shape[-1]
    xr = jax.nn.relu(mm(inputs, p["w1"]) + p["b1"])
    gi = mm(xr, p["w_ih"]) + p["b_ih"]
    gh = mm(h, p["w_hh"]) + p["b_hh"]
    r = jax.nn.sigmoid(gi[:, :H] + gh[:, :H])
    z = jax.nn.sigmoid(gi[:, H:2 * H] + gh[:, H:2 * H])
    n = jnp.tanh(gi[:, 2 * H:] + r * gh[:, 2 * H:])
    h_new = (1.0 - z) * n + z * h
    actions = jnp.tanh(mm(h_new, p["w2"]) + p["b2"])
    return actions, h_new


if __name__ == "__main__":
    B, D_IN, HID, ACT = 8, 32, 32, 4  # batch, input_shape, rnn_hidden_dim, dim_actions

    key = jax.random.PRNGKey(0)
    k_in, k_h, k_p = jax.random.split(key, 3)
    inputs = jax.random.normal(k_in, (B, D_IN), jnp.float32)
    hidden = jax.random.normal(k_h, (B, HID), jnp.float32)
    params = make_params(k_p, D_IN, HID, ACT)

    # Pack once, get a jitted step function (module-exact interface).
    forward = make_rnn_agent_forward(params)
    out = forward(inputs, hidden)
    actions = jax.block_until_ready(out["actions"])
    h_out = jax.block_until_ready(out["hidden_state"])

    ref_act, ref_h = reference_forward(inputs, hidden, params)
    assert actions.shape == (B, ACT) and h_out.shape == (B, HID)
    # bf16 hidden-state carry + bf16 outputs add ~1e-2 worst-case deviation
    # from the f32-carry PyTorch-style reference.
    assert jnp.allclose(actions, ref_act, atol=3e-2, rtol=3e-2), "actions mismatch"
    assert jnp.allclose(h_out, ref_h, atol=3e-2, rtol=3e-2), "hidden mismatch"

    # Fast rollout path: lane-padded bf16 hidden carry fed straight back
    # (no per-step pad/slice HBM round-trips).
    rollout_step = make_rnn_agent_forward(params, unpad_outputs=False)
    h_carry = hidden
    for _ in range(3):
        step_out = rollout_step(inputs, h_carry)
        h_carry = step_out["hidden_state"]       # (B, Hp) bf16, reused as-is
    h_carry = jax.block_until_ready(h_carry)
    assert h_carry.shape[0] == B
    assert bool(jnp.all(jnp.isfinite(h_carry.astype(jnp.float32))))

    print("KERNEL_OK")
</pallas_src>

<mosaic_0001>
module attributes {stable_mosaic.version = 11 : i64} {
  func.func @probe_kernel(%arg0: i32, %arg1: memref<8x128xf32, #tpu.memory_space<vmem>>, %arg2: memref<8x128xf32, #tpu.memory_space<vmem>>, %arg3: memref<8x128xf32, #tpu.memory_space<vmem>>) attributes {dimension_semantics = [#tpu.dimension_semantics<arbitrary>], iteration_bounds = array<i64: 2>, scalar_prefetch = 0 : i64, scratch_operands = 0 : i64, tpu.core_type = #tpu.core_type<tc>, window_params = [{transform_indices = @transform_0, window_bounds = array<i64: 8, 128>}, {pipeline_mode = #tpu.pipeline_mode<synchronous>, transform_indices = @transform_1, window_bounds = array<i64: 8, 128>}, {transform_indices = @transform_2, window_bounds = array<i64: 8, 128>}]} {
    %c0 = arith.constant 0 : index
    %c0_0 = arith.constant 0 : index
    %0 = vector.load %arg1[%c0, %c0_0] : memref<8x128xf32, #tpu.memory_space<vmem>>, vector<8x128xf32>
    %c0_1 = arith.constant 0 : index
    %c0_2 = arith.constant 0 : index
    %1 = vector.load %arg2[%c0_1, %c0_2] : memref<8x128xf32, #tpu.memory_space<vmem>>, vector<8x128xf32>
    %2 = arith.addf %0, %1 : vector<8x128xf32>
    %c0_3 = arith.constant 0 : index
    %c0_4 = arith.constant 0 : index
    %3 = vector.load %arg3[%c0_3, %c0_4] : memref<8x128xf32, #tpu.memory_space<vmem>>, vector<8x128xf32>
    tpu.vector_store %arg3[%c0_3, %c0_4], %2 {strides = array<i32>} : memref<8x128xf32, #tpu.memory_space<vmem>>, vector<8x128xf32>,
    return
  }
  func.func @transform_0(%arg0: i32) -> (i32, i32) {
    %c0_i32 = arith.constant 0 : i32
    %c0_i32_0 = arith.constant 0 : i32
    return %arg0, %c0_i32 : i32, i32
  }
  func.func @transform_1(%arg0: i32) -> (i32, i32) {
    %c0_i32 = arith.constant 0 : i32
    %c0_i32_0 = arith.constant 0 : i32
    %c0_i32_1 = arith.constant 0 : i32
    return %c0_i32, %c0_i32_0 : i32, i32
  }
  func.func @transform_2(%arg0: i32) -> (i32, i32) {
    %c0_i32 = arith.constant 0 : i32
    %c0_i32_0 = arith.constant 0 : i32
    return %arg0, %c0_i32 : i32, i32
  }
}

module attributes {stable_mosaic.version = 11 : i64} {
  func.func @kernel(%arg0: i32, %arg1: memref<8x32xf32, #tpu.memory_space<vmem>>, %arg2: memref<8x128xbf16, #tpu.memory_space<vmem>>, %arg3: memref<32x128xbf16, #tpu.memory_space<vmem>>, %arg4: memref<1x128xf32, #tpu.memory_space<vmem>>, %arg5: memref<128x128xbf16, #tpu.memory_space<vmem>>, %arg6: memref<1x128xf32, #tpu.memory_space<vmem>>, %arg7: memref<128x128xbf16, #tpu.memory_space<vmem>>, %arg8: memref<1x128xf32, #tpu.memory_space<vmem>>, %arg9: memref<8x128xbf16, #tpu.memory_space<vmem>>, %arg10: memref<8x128xbf16, #tpu.memory_space<vmem>>) attributes {dimension_semantics = [#tpu.dimension_semantics<parallel>], iteration_bounds = array<i64: 1>, scalar_prefetch = 0 : i64, scratch_operands = 0 : i64, tpu.core_type = #tpu.core_type<tc>, window_params = [{transform_indices = @transform_0, window_bounds = array<i64: 8, 32>}, {transform_indices = @transform_1, window_bounds = array<i64: 8, 128>}, {pipeline_mode = #tpu.pipeline_mode<synchronous>, transform_indices = @transform_2, window_bounds = array<i64: 32, 128>}, {pipeline_mode = #tpu.pipeline_mode<synchronous>, transform_indices = @transform_3, window_bounds = array<i64: 1, 128>}, {pipeline_mode = #tpu.pipeline_mode<synchronous>, transform_indices = @transform_4, window_bounds = array<i64: 128, 128>}, {pipeline_mode = #tpu.pipeline_mode<synchronous>, transform_indices = @transform_5, window_bounds = array<i64: 1, 128>}, {pipeline_mode = #tpu.pipeline_mode<synchronous>, transform_indices = @transform_6, window_bounds = array<i64: 128, 128>}, {pipeline_mode = #tpu.pipeline_mode<synchronous>, transform_indices = @transform_7, window_bounds = array<i64: 1, 128>}, {transform_indices = @transform_8, window_bounds = array<i64: 8, 128>}, {transform_indices = @transform_9, window_bounds = array<i64: 8, 128>}]} {
    %c0 = arith.constant 0 : index
    %c0_0 = arith.constant 0 : index
    %0 = vector.load %arg1[%c0, %c0_0] : memref<8x32xf32, #tpu.memory_space<vmem>>, vector<8x32xf32>
    %1 = arith.truncf %0 : vector<8x32xf32> to vector<8x32xbf16>
    %c0_1 = arith.constant 0 : index
    %c0_2 = arith.constant 0 : index
    %2 = vector.load %arg2[%c0_1, %c0_2] : memref<8x128xbf16, #tpu.memory_space<vmem>>, vector<8x128xbf16>
    %3 = arith.extf %2 : vector<8x128xbf16> to vector<8x128xf32>
    %c0_3 = arith.constant 0 : index
    %c0_4 = arith.constant 0 : index
    %4 = vector.load %arg3[%c0_3, %c0_4] : memref<32x128xbf16, #tpu.memory_space<vmem>>, vector<32x128xbf16>
    %cst = arith.constant dense<0.000000e+00> : vector<8x128xf32>
    %5 = tpu.matmul %1, %4, %cst {dimension_numbers = #tpu.dot_dimension_numbers<[1], [0], [0], [1], [0, 0, 1, 1], [], []>} : vector<8x32xbf16>, vector<32x128xbf16>, vector<8x128xf32> -> vector<8x128xf32>
    %c0_5 = arith.constant 0 : index
    %c0_6 = arith.constant 0 : index
    %6 = vector.load %arg4[%c0_5, %c0_6] : memref<1x128xf32, #tpu.memory_space<vmem>>, vector<1x128xf32>
    %7 = vector.broadcast %6 : vector<1x128xf32> to vector<8x128xf32>
    %8 = arith.addf %5, %7 : vector<8x128xf32>
    %cst_7 = arith.constant 0.000000e+00 : f32
    %9 = vector.broadcast %cst_7 : f32 to vector<8x128xf32>
    %10 = arith.maximumf %8, %9 : vector<8x128xf32>
    %c32_i32 = arith.constant 32 : i32
    %11 = tpu.dynamic_rotate %3 by %c32_i32 dim 1 : vector<8x128xf32>, i32 -> vector<8x128xf32>
    %12 = arith.addf %10, %11 : vector<8x128xf32>
    %13 = arith.truncf %12 : vector<8x128xf32> to vector<8x128xbf16>
    %c0_8 = arith.constant 0 : index
    %c0_9 = arith.constant 0 : index
    %14 = vector.load %arg5[%c0_8, %c0_9] : memref<128x128xbf16, #tpu.memory_space<vmem>>, vector<128x128xbf16>
    %cst_10 = arith.constant dense<0.000000e+00> : vector<8x128xf32>
    %15 = tpu.matmul %13, %14, %cst_10 {dimension_numbers = #tpu.dot_dimension_numbers<[1], [0], [0], [1], [0, 0, 1, 1], [], []>} : vector<8x128xbf16>, vector<128x128xbf16>, vector<8x128xf32> -> vector<8x128xf32>
    %c0_11 = arith.constant 0 : index
    %c0_12 = arith.constant 0 : index
    %16 = vector.load %arg6[%c0_11, %c0_12] : memref<1x128xf32, #tpu.memory_space<vmem>>, vector<1x128xf32>
    %17 = vector.broadcast %16 : vector<1x128xf32> to vector<8x128xf32>
    %18 = arith.addf %15, %17 : vector<8x128xf32>
    %19 = arith.negf %18 : vector<8x128xf32>
    %20 = math.exp %19 : vector<8x128xf32>
    %cst_13 = arith.constant 1.000000e+00 : f32
    %21 = vector.broadcast %cst_13 : f32 to vector<8x128xf32>
    %22 = arith.addf %21, %20 : vector<8x128xf32>
    %23 = arith.divf %21, %22 : vector<8x128xf32>
    %c96_i32 = arith.constant 96 : i32
    %24 = tpu.dynamic_rotate %18 by %c96_i32 dim 1 : vector<8x128xf32>, i32 -> vector<8x128xf32>
    %25 = arith.negf %24 : vector<8x128xf32>
    %26 = math.exp %25 : vector<8x128xf32>
    %cst_14 = arith.constant 1.000000e+00 : f32
    %27 = vector.broadcast %cst_14 : f32 to vector<8x128xf32>
    %28 = arith.addf %27, %26 : vector<8x128xf32>
    %29 = arith.divf %27, %28 : vector<8x128xf32>
    %c64_i32 = arith.constant 64 : i32
    %30 = tpu.dynamic_rotate %18 by %c64_i32 dim 1 : vector<8x128xf32>, i32 -> vector<8x128xf32>
    %c32_i32_15 = arith.constant 32 : i32
    %31 = tpu.dynamic_rotate %18 by %c32_i32_15 dim 1 : vector<8x128xf32>, i32 -> vector<8x128xf32>
    %32 = arith.mulf %23, %31 : vector<8x128xf32>
    %33 = arith.addf %30, %32 : vector<8x128xf32>
    %34 = math.tanh %33 : vector<8x128xf32>
    %cst_16 = arith.constant 1.000000e+00 : f32
    %35 = vector.broadcast %cst_16 : f32 to vector<8x128xf32>
    %36 = arith.subf %35, %29 : vector<8x128xf32>
    %37 = arith.mulf %36, %34 : vector<8x128xf32>
    %38 = arith.mulf %29, %3 : vector<8x128xf32>
    %39 = arith.addf %37, %38 : vector<8x128xf32>
    %40 = tpu.iota {dimensions = array<i32: 1>} : vector<8x128xi32>
    %c32_i32_17 = arith.constant 32 : i32
    %41 = vector.broadcast %c32_i32_17 : i32 to vector<8x128xi32>
    %42 = arith.cmpi slt, %40, %41 : vector<8x128xi32>
    %cst_18 = arith.constant 0.000000e+00 : f32
    %43 = vector.broadcast %cst_18 : f32 to vector<8x128xf32>
    %44 = arith.select %42, %39, %43 : vector<8x128xi1>, vector<8x128xf32>
    %45 = arith.truncf %44 : vector<8x128xf32> to vector<8x128xbf16>
    %c0_19 = arith.constant 0 : index
    %c0_20 = arith.constant 0 : index
    %46 = vector.load %arg7[%c0_19, %c0_20] : memref<128x128xbf16, #tpu.memory_space<vmem>>, vector<128x128xbf16>
    %cst_21 = arith.constant dense<0.000000e+00> : vector<8x128xf32>
    %47 = tpu.matmul %45, %46, %cst_21 {dimension_numbers = #tpu.dot_dimension_numbers<[1], [0], [0], [1], [0, 0, 1, 1], [], []>} : vector<8x128xbf16>, vector<128x128xbf16>, vector<8x128xf32> -> vector<8x128xf32>
    %c0_22 = arith.constant 0 : index
    %c0_23 = arith.constant 0 : index
    %48 = vector.load %arg8[%c0_22, %c0_23] : memref<1x128xf32, #tpu.memory_space<vmem>>, vector<1x128xf32>
    %49 = vector.broadcast %48 : vector<1x128xf32> to vector<8x128xf32>
    %50 = arith.addf %47, %49 : vector<8x128xf32>
    %51 = math.tanh %50 : vector<8x128xf32>
    %52 = arith.truncf %44 : vector<8x128xf32> to vector<8x128xbf16>
    %c0_24 = arith.constant 0 : index
    %c0_25 = arith.constant 0 : index
    %53 = vector.load %arg9[%c0_24, %c0_25] : memref<8x128xbf16, #tpu.memory_space<vmem>>, vector<8x128xbf16>
    tpu.vector_store %arg9[%c0_24, %c0_25], %52 {strides = array<i32>} : memref<8x128xbf16, #tpu.memory_space<vmem>>, vector<8x128xbf16>,
    %54 = arith.truncf %51 : vector<8x128xf32> to vector<8x128xbf16>
    %c0_26 = arith.constant 0 : index
    %c0_27 = arith.constant 0 : index
    %55 = vector.load %arg10[%c0_26, %c0_27] : memref<8x128xbf16, #tpu.memory_space<vmem>>, vector<8x128xbf16>
    tpu.vector_store %arg10[%c0_26, %c0_27], %54 {strides = array<i32>} : memref<8x128xbf16, #tpu.memory_space<vmem>>, vector<8x128xbf16>,
    return
  }
  func.func @transform_0(%arg0: i32) -> (i32, i32) {
    %c0_i32 = arith.constant 0 : i32
    %c0_i32_0 = arith.constant 0 : i32
    return %arg0, %c0_i32 : i32, i32
  }
  func.func @transform_1(%arg0: i32) -> (i32, i32) {
    %c0_i32 = arith.constant 0 : i32
    %c0_i32_0 = arith.constant 0 : i32
    return %arg0, %c0_i32 : i32, i32
  }
  func.func @transform_2(%arg0: i32) -> (i32, i32) {
    %c0_i32 = arith.constant 0 : i32
    %c0_i32_0 = arith.constant 0 : i32
    %c0_i32_1 = arith.constant 0 : i32
    return %c0_i32, %c0_i32_0 : i32, i32
  }
  func.func @transform_3(%arg0: i32) -> (i32, i32) {
    %c0_i32 = arith.constant 0 : i32
    %c0_i32_0 = arith.constant 0 : i32
    %c0_i32_1 = arith.constant 0 : i32
    return %c0_i32, %c0_i32_0 : i32, i32
  }
  func.func @transform_4(%arg0: i32) -> (i32, i32) {
    %c0_i32 = arith.constant 0 : i32
    %c0_i32_0 = arith.constant 0 : i32
    %c0_i32_1 = arith.constant 0 : i32
    return %c0_i32, %c0_i32_0 : i32, i32
  }
  func.func @transform_5(%arg0: i32) -> (i32, i32) {
    %c0_i32 = arith.constant 0 : i32
    %c0_i32_0 = arith.constant 0 : i32
    %c0_i32_1 = arith.constant 0 : i32
    return %c0_i32, %c0_i32_0 : i32, i32
  }
  func.func @transform_6(%arg0: i32) -> (i32, i32) {
    %c0_i32 = arith.constant 0 : i32
    %c0_i32_0 = arith.constant 0 : i32
    %c0_i32_1 = arith.constant 0 : i32
    return %c0_i32, %c0_i32_0 : i32, i32
  }
  func.func @transform_7(%arg0: i32) -> (i32, i32) {
    %c0_i32 = arith.constant 0 : i32
    %c0_i32_0 = arith.constant 0 : i32
    %c0_i32_1 = arith.constant 0 : i32
    return %c0_i32, %c0_i32_0 : i32, i32
  }
  func.func @transform_8(%arg0: i32) -> (i32, i32) {
    %c0_i32 = arith.constant 0 : i32
    %c0_i32_0 = arith.constant 0 : i32
    return %arg0, %c0_i32 : i32, i32
  }
  func.func @transform_9(%arg0: i32) -> (i32, i32) {
    %c0_i32 = arith.constant 0 : i32
    %c0_i32_0 = arith.constant 0 : i32
    return %arg0, %c0_i32 : i32, i32
  }
}

</mosaic_0001>

<bundles_post_ra>
// kernel: tpu_custom_call.1
= control target key start
LH: loop header
LB: loop body
LE: loop exit
PB: predicated region body
PF: predicated region fallthrough
CT: control target
= control target key end

     0   :  { %7 = vsyncpa [#allocation3], 0  ;;  %s649_s0 = inlined_call_operand.hbm [shape: f32[16,128], index: 0, kind: input, shape index: {}]   ;;  %s650_s1 = inlined_call_operand.hbm [shape: f32[8,128], index: 1, kind: input, shape index: {}]   ;;  %s651_s2 = inlined_call_operand.hbm [shape: f32[16,128], index: 2, kind: output, shape index: {}]  }
   0x1   :  { %9 = vsyncpa [#allocation3 + $0x1], 0 }
   0x2   :  { %10 = vsyncpa [#allocation6], 0 }
   0x3   :  { %11 = vsyncpa [#allocation4], 0 }
   0x4   :  { %13 = vsyncpa [#allocation4 + $0x1], 0  ;;  %s483_s9 = smov 0   ;;  %s485_s10 = smov 0  }
   0x5   :  { %s487_s11 = smov 0   ;;  %s489_s12 = smov 0  }
   0x6 LB: > { %s504_s13 = sadd.s32 4294967295, %s463_s12   ;;  %s270_s14 = sadd.s32 4294967294, %s463_s12   ;;  %s463_s12 = sphi %s489_s12, %s674_s12   ;;  %s459_s11 = sphi %s487_s11, %s673_s11   ;;  %s455_s10 = sphi %s485_s10, %s672_s10   ;;  %s451_s9 = sphi %s483_s9, %s671_s9  }
   0x7   : > { %p39_p0 = scmp.ne.s32.totalorder %s455_s10, %s451_s9  ;;  %p652_p1 = scmp.eq.s32.totalorder %s504_s13, 0 }
   0x8   : > { %p90_p3 = scmp.eq.s32.totalorder %s270_s14, 1  ;;  %p271_p5 = scmp.ge.s32.totalorder %s463_s12, 1 }
   0x9   : > { %p513_p4 = por %p652_p1, %p39_p0  ;;  %p97_p7 = scmp.lt.s32.totalorder %s463_s12, 3 }
   0xa   : > { %p518_p6 = por %p90_p3, %p39_p0  ;;  %s465_s18 = smov [#allocation5]  }
   0xb   : > { %s656_s15 = scalar_select %p513_p4, 1, 0 }
   0xc   : > { %s657_s16 = scalar_select %p518_p6, 1, 0 }
   0xd   : > { %p523_p8 = pnand %p271_p5, %p97_p7  ;;  %s110_s19 = sshll.u32 %s465_s18, 4  ;;  %s111_s19 = int_to_ptr.vmem [resolvable:$true] %s110_s19 }
   0xe   : > { %s531_s20 = sadd.s32 1, %s463_s12   ;;  %s26_s24 = sadd.s32 1, %s459_s11 }
   0xf   : > { %s658_s17 = scalar_select %p523_p8, 1, 0 }
  0x10   : > { %p292_p10 = pneg %p523_p8  ;;  %s23_s22 = ssub.s32 %s463_s12, %s531_s20 }
  0x11   : > { %p541_p12 = scmp.eq.s32.totalorder %s23_s22, 0  ;;  %p33_p13 = scmp.ne.s32.totalorder %s459_s11, %s455_s10 }
  0x12   : > { %p535_p11 = pnand %p292_p10, %p652_p1  ;;  %s352_s25 = scalar_lea.vmem %s111_s19, 128 }
  0x13   : > { %p353_p3 = scmp.ne.s32.totalorder %s111_s19, %s352_s25  ;;  %p360_p9 = scmp.lt.s32.totalorder %s111_s19, %s111_s19 }
  0x14   : > { %p343_p0 = pneg %p535_p11  ;;  %p361_p2 = scmp.lt.s32.totalorder %s352_s25, %s352_s25 }
  0x16   : > { %p355_p5 = pnand %p353_p3, %p343_p0  ;;  %p362_p10 = por %p361_p2, %p360_p9 }
  0x18   : > { %p356_p7 = pneg %p355_p5 }
  0x1a   : > { %p363_p1 = pnand %p362_p10, %p356_p7 }
  0x1c   : > { %366 = shalt.err (!%p363_p1)
}
  0x1d   : > { %295 = dma.hbm_to_vmem [thread:$0]  (!%p535_p11), %s650_s1, 128, %s111_s19, [#allocation6]  }
  0x1e   : > { %s558_s28 = scalar_select %p541_p12, %s459_s11, %s26_s24  }
  0x1f   : > { %p34_p1 = scmp.eq.s32.totalorder %s463_s12, 0  ;;  %p661_p2 = scmp.eq.s32.totalorder %s504_s13, 1 }
  0x20   : > { %p305_p0 = scmp.lt.s32.totalorder %s463_s12, 2  ;;  %s121_s30 = sand.u32 1, %s459_s11  }
  0x21   : > { %p566_p9 = por %p661_p2, %p33_p13  ;;  %p35_p3 = por %p34_p1, %p33_p13 }
  0x22   : > { %s274_s3 = sshll.u32 %s121_s30, 3  ;;  %s275_s4 = sshll.u32 %s463_s12, 7 }
  0x23   : > { %s662_s29 = scalar_select %p566_p9, 1, 0 }
  0x24   : > { %s579_s7 = scalar_lea.hbm %s649_s0, %s275_s4  ;;  %s125_s8 = scalar_lea.vmem [#allocation2], %s274_s3 }
  0x25   : > { %s132_s14 = sshll.u32 %s125_s8, 4  ;;  %p581_p11 = pnand %p305_p0, %p35_p3  ;;  %s133_s14 = int_to_ptr.vmem [resolvable:$true] %s132_s14 }
  0x26   : > { %s122_s19 = scalar_lea.sflag [#allocation3], %s121_s30  ;;  %s367_s21 = scalar_lea.hbm %s579_s7, 128 }
  0x27   : > { %p368_p12 = scmp.ne.s32.totalorder %s579_s7, %s367_s21  ;;  %p369_p13 = pneg %p581_p11 }
  0x28   : > { %s372_s24 = scalar_lea.hbm %s649_s0, 256  ;;  %p373_p10 = scmp.lt.s32.totalorder %s579_s7, %s649_s0 }
  0x29   : > { %p370_p5 = pnand %p369_p13, %p368_p12  ;;  %p374_p1 = scmp.lt.s32.totalorder %s372_s24, %s367_s21 }
  0x2b   : > { %p371_p7 = pneg %p370_p5  ;;  %p375_p2 = por %p374_p1, %p373_p10 }
  0x2d   : > { %p376_p0 = pnand %p375_p2, %p371_p7 }
  0x2f   : > { %379 = shalt.err (!%p376_p0)
}
  0x30   : > { %s380_s27 = scalar_lea.vmem %s133_s14, 128  ;;  %s466_s30 = smov [#allocation2]  }
  0x31   : > { %p381_p3 = scmp.ne.s32.totalorder %s133_s14, %s380_s27  ;;  %s385_s3 = sshll.u32 %s466_s30, 4  ;;  %s386_s3 = int_to_ptr.vmem [resolvable:$false] %s385_s3 }
  0x32   : > { %s387_s4 = scalar_lea.vmem %s386_s3, 256  ;;  %p388_p12 = scmp.lt.s32.totalorder %s133_s14, %s386_s3 }
  0x33   : > { %p383_p6 = pnand %p381_p3, %p369_p13  ;;  %p389_p5 = scmp.lt.s32.totalorder %s387_s4, %s380_s27 }
  0x35   : > { %p384_p9 = pneg %p383_p6  ;;  %p390_p4 = por %p389_p5, %p388_p12 }
  0x37   : > { %p391_p8 = pnand %p390_p4, %p384_p9 }
  0x39   : > { %394 = shalt.err (!%p391_p8)
}
  0x3a   : > { %299 = dma.hbm_to_vmem [thread:$0]  (!%p581_p11), %s579_s7, 128, %s133_s14, %s122_s19  }
  0x3b   : > { %p664_p7 = scmp.ne.s32.totalorder %s658_s17, 0 }
  0x3c   : > { %s602_s5 = sand.u32 (!%p664_p7), 1, %s455_s10   ;;  %p665_p6 = scmp.ne.s32.totalorder (!%p664_p7), %s656_s15, 0 }
  0x3d   : > { %141 = sbr.rel (%p664_p7) target bundleno = 95 (0x5f), region = 28  ;;  %s277_s6 = sshll.u32 (!%p664_p7), %s602_s5, 3 }
  0x3e   : > { %s144_s8 = scalar_lea.sflag (!%p664_p7), [#allocation3], %s602_s5  ;;  %s147_s21 = scalar_lea.vmem (!%p664_p7), [#allocation2], %s277_s6 }
  0x42   : > { %438 = dma.done.wait (%p665_p6), %s144_s8, 128  }
  0x43   : > { %440 = vsyncadd (%p665_p6), %s144_s8, 4294967168  ;;  %p666_p4 = scmp.eq.s32.totalorder %s504_s13, 0 }
  0x45   : > { %442 = dma.done.wait (%p666_p4), [#allocation6], 128   ;;  %p667_p8 = pmov %p666_p4 }
  0x46   : > { %s171_s17 = scalar_lea.vmem [#allocation7], %s277_s6  ;;  %s281_s14 = sshll.u32 %s504_s13, 7  ;;  %v172_v0 = vld [vmem:[%s147_s21] sm:$0xff]  ;;  %v173_v1 = vld [vmem:[#allocation5] sm:$0xff] }
  0x47   : > { %444 = vsyncadd (%p667_p8), [#allocation6], 4294967168  ;;  %s190_s7 = sshll.u32 %s171_s17, 4  ;;  %v174_v2 = vadd.f32 %v173_v1, %v172_v0  ;;  %s188_s15 = scalar_lea.hbm %s651_s2, %s281_s14  ;;  %s191_s7 = int_to_ptr.vmem [resolvable:$true] %s190_s7 }
  0x48   : > { %s177_s22 = scalar_lea.sflag [#allocation4], %s602_s5  ;;  %s395_s23 = scalar_lea.vmem %s191_s7, 128 }
  0x49   : > { %175 = vst [vmem:[%s171_s17] sm:$0xff] %v174_v2  ;;  %p396_p9 = scmp.ne.s32.totalorder %s191_s7, %s395_s23  ;;  %p668_p11 = scmp.ne.s32.totalorder %s662_s29, 0 }
  0x4a   : > { %s467_s24 = smov [#allocation7]  }
  0x4b   : > { %p397_p13 = pnand %p396_p9, %p668_p11  ;;  %s399_s25 = sshll.u32 %s467_s24, 4  ;;  %s400_s25 = int_to_ptr.vmem [resolvable:$false] %s399_s25 }
  0x4c   : > { %s401_s26 = scalar_lea.vmem %s400_s25, 256  ;;  %p402_p1 = scmp.lt.s32.totalorder %s191_s7, %s400_s25 }
  0x4d   : > { %p398_p10 = pneg %p397_p13  ;;  %p403_p2 = scmp.lt.s32.totalorder %s401_s26, %s395_s23 }
  0x4f   : > { %p404_p0 = por %p403_p2, %p402_p1 }
  0x51   : > { %p405_p3 = pnand %p404_p0, %p398_p10 }
  0x53   : > { %408 = shalt.err (!%p405_p3)
}
  0x54   : > { %s409_s13 = scalar_lea.hbm %s188_s15, 128  ;;  %s413_s3 = scalar_lea.hbm %s651_s2, 256 }
  0x55   : > { %p410_p12 = scmp.ne.s32.totalorder %s188_s15, %s409_s13  ;;  %p414_p6 = scmp.lt.s32.totalorder %s188_s15, %s651_s2 }
  0x56   : > { %p415_p4 = scmp.lt.s32.totalorder %s413_s3, %s409_s13 }
  0x57   : > { %p411_p5 = pnand %p410_p12, %p668_p11 }
  0x58   : > { %p416_p8 = por %p415_p4, %p414_p6 }
  0x59   : > { %p412_p7 = pneg %p411_p5 }
  0x5b   : > { %p417_p9 = pnand %p416_p8, %p412_p7 }
  0x5d   : > { %420 = shalt.err (!%p417_p9)
}
  0x5e   : > { %290 = dma.vmem_to_hbm [thread:$0]  (%p668_p11), %s191_s7, 128, %s188_s15, %s177_s22  }
  0x5f PF: > { %s202_s6 = sand.u32 1, %s451_s9   ;;  %p669_p13 = scmp.ne.s32.totalorder %s657_s16, 0 }
  0x60   : > { %p670_p10 = scmp.ge.s32.totalorder %s463_s12, 2  ;;  %s203_s8 = scalar_lea.sflag [#allocation4], %s202_s6 }
  0x62   : > { %p301_p1 = pnand %p670_p10, %p669_p13 }
  0x64   : > { %p302_p2 = pneg %p301_p1 }
  0x66   : > { %446 = dma.done.wait (%p302_p2), %s203_s8, 128  }
  0x67   : > { %448 = vsyncadd (%p302_p2), %s203_s8, 4294967168  ;;  %p16_p0 = scmp.ge.s32.totalorder %s531_s20, 4   ;;  %s671_s9 = smov %s455_s10 }
  0x68   : > { %s672_s10 = smov %s459_s11  ;;  %s673_s11 = smov %s558_s28 }
  0x69   : > { %s674_s12 = smov %s531_s20  ;;  %18 = sbr.rel (!%p16_p0) target bundleno = 6 (0x6), region = 77 }
  0x6e   :  { %208 = vsyncpa [#allocation3], 1 }
  0x6f   :  { %210 = vsyncpa [#allocation3 + $0x1], 1 }
  0x70   :  { %211 = vsyncpa [#allocation6], 1 }
  0x71   :  { %212 = vsyncpa [#allocation4], 1 }
  0x72   :  { %214 = vsyncpa [#allocation4 + $0x1], 1 }

// kernel: forward.1
= control target key start
LH: loop header
LB: loop body
LE: loop exit
PB: predicated region body
PF: predicated region fallthrough
CT: control target
= control target key end

     0   :  { %15 = vsyncpa [#allocation3], 0  ;;  %s709_s0 = inlined_call_operand.vmem [shape: f32[8,32], index: 0, kind: input, shape index: {}]   ;;  %s710_s1 = inlined_call_operand.vmem [shape: bf16[8,128], index: 1, kind: input, shape index: {}]   ;;  %s711_s2 = inlined_call_operand.vmem [shape: bf16[32,128], index: 2, kind: input, shape index: {}]   ;;  %s712_s3 = inlined_call_operand.vmem [shape: f32[1,128], index: 3, kind: input, shape index: {}]   ;;  %s713_s4 = inlined_call_operand.hbm [shape: bf16[128,128], index: 4, kind: input, shape index: {}]   ;;  %s714_s5 = inlined_call_operand.vmem [shape: f32[1,128], index: 5, kind: input, shape index: {}]   ;;  %s715_s6 = inlined_call_operand.hbm [shape: bf16[128,128], index: 6, kind: input, shape index: {}]   ;;  %s716_s7 = inlined_call_operand.vmem [shape: f32[1,128], index: 7, kind: input, shape index: {}]   ;;  %s717_s8 = inlined_call_operand.vmem [shape: bf16[8,128], index: 8, kind: output, shape index: {0}]   ;;  %s718_s9 = inlined_call_operand.vmem [shape: bf16[8,128], index: 9, kind: output, shape index: {1}]  }
   0x1   :  { %16 = vsyncpa [#allocation5], 0  ;;  %s580_s30 = smov [#allocation2]  }
   0x2   :  { %s30_s10 = sshll.u32 %s580_s30, 4  ;;  %s31_s10 = int_to_ptr.vmem [resolvable:$true] %s30_s10 }
   0x3   :  { %s544_s11 = scalar_lea.vmem %s31_s10, 1024  ;;  %p549_p1 = scmp.lt.s32.totalorder %s31_s10, %s31_s10 }
   0x4   :  { %p545_p0 = scmp.ne.s32.totalorder %s31_s10, %s544_s11  ;;  %p550_p2 = scmp.lt.s32.totalorder %s544_s11, %s544_s11 }
   0x6   :  { %p551_p3 = por %p550_p2, %p549_p1 }
   0x8   :  { %p552_p4 = pnand %p551_p3, %p545_p0 }
   0xa   :  { %555 = shalt.err (!%p552_p4)
}
   0xb   :  { %s581_s12 = smov 64   ;;  %s582_s13 = smov 4  }
   0xc   :  { %36 = dma.hbm_to_vmem [thread:$0]  %s713_s4, 1024, %s31_s10, [#allocation3], %s581_s12, %s581_s12, %s582_s13  }
   0xd   :  { %s583_s16 = smov [#allocation4]  }
   0xe   :  { %s44_s17 = sshll.u32 %s583_s16, 4  ;;  %s45_s17 = int_to_ptr.vmem [resolvable:$true] %s44_s17 }
   0xf   :  { %s564_s18 = scalar_lea.vmem %s45_s17, 1024  ;;  %p569_p6 = scmp.lt.s32.totalorder %s45_s17, %s45_s17 }
  0x10   :  { %p565_p5 = scmp.ne.s32.totalorder %s45_s17, %s564_s18  ;;  %p570_p7 = scmp.lt.s32.totalorder %s564_s18, %s564_s18 }
  0x12   :  { %p571_p8 = por %p570_p7, %p569_p6 }
  0x14   :  { %p572_p9 = pnand %p571_p8, %p565_p5 }
  0x16   :  { %575 = shalt.err (!%p572_p9)
}
  0x17   :  { %50 = dma.hbm_to_vmem [thread:$0]  %s715_s6, 1024, %s45_s17, [#allocation5], %s581_s12, %s581_s12, %s582_s13  }
  0x18   :  { %576 = dma.done.wait [#allocation3], 1024  }
  0x19   :  { %577 = vsyncadd [#allocation3], 4294966272 }
  0x1a   :  { %578 = dma.done.wait [#allocation5], 1024  }
  0x1b   :  { %579 = vsyncadd [#allocation5], 4294966272  ;;  %v584_v0 = vmov 0.0   ;;  %vm585_vm0 = vmmov 0   ;;  %v506_v1 = vld [vmem:[%s711_s2 + $0x8] sm:$0xff]   ;;  %v507_v2 = vld [vmem:[%s711_s2] sm:$0xff]   ;;  %v272_v51 = vlaneseq }
  0x1c   :  { %450 = vmatprep.subr.bf16.mxu0 %v584_v0  ;;  %454 = vmatprep.mubr.msk.bf16.mxu0 %vm585_vm0, %v584_v0  ;;  %v60_v3 = vld [vmem:[%s709_s0] sm:$0xff]  ;;  %v508_v6 = vld [vmem:[#allocation2 + $0x38] sm:$0xff]   ;;  %s586_s27 = smov 32   ;;  %v509_v8 = vld [vmem:[#allocation2 + $0x30] sm:$0xff]   ;;  %vm87_vm1 = vcmask 261120  }
  0x1d   :  { %458 = vmatprep.subr.bf16.mxu1 %v584_v0  ;;  %474 = vmatprep.mubr.msk.bf16.mxu1 %vm585_vm0, %v584_v0  ;;  %v666_v4 = vld [vmem:[%s710_s1] sm:$0xf]  ;;  %v61_v7 = vpack.c.bf16 %v60_v3, %v60_v3  ;;  %v510_v9 = vld [vmem:[#allocation2 + $0x28] sm:$0xff]   ;;  %v512_v11 = vld [vmem:[#allocation2 + $0x18] sm:$0xff]   ;;  %v273_v52 = vand.u32 127, %v272_v51 }
  0x1e   :  { %451 = vmatpush3.bf16.msra.mxu0 %v506_v1  ;;  %v63_v5 = vunpack.c.l.bf16 %v666_v4  ;;  %459 = vmatpush3.bf16.msra.mxu1 %v508_v6  ;;  %v511_v10 = vld [vmem:[#allocation2 + $0x20] sm:$0xff]   ;;  %v513_v12 = vld [vmem:[#allocation2 + $0x10] sm:$0xff]   ;;  %v514_v13 = vld [vmem:[#allocation2 + $0x8] sm:$0xff]  }
  0x1f   :  { %452 = vmatprep.subr.bf16.mxu0 %v584_v0  ;;  %460 = vmatprep.subr.bf16.mxu1 %v584_v0  ;;  %v515_v14 = vld [vmem:[#allocation2] sm:$0xff]   ;;  %v516_v25 = vld [vmem:[#allocation4 + $0x38] sm:$0xff]   ;;  %v517_v29 = vld [vmem:[#allocation4 + $0x30] sm:$0xff]   ;;  %vm274_vm2 = vcmp.lt.s32.totalorder %v273_v52, 32 }
  0x20   :  { %132 = vrot.lane.b32.xlu0 %v63_v5, %s586_s27  ;;  %v402_v15 = vld [vmem:[%s712_s3] ss:$0 sm:$0xff]  ;;  %s587_s3 = smov 96   ;;  %v518_v32 = vld [vmem:[#allocation4 + $0x28] sm:$0xff]   ;;  %v520_v35 = vld [vmem:[#allocation4 + $0x18] sm:$0xff]  }
  0x21   :  { %v406_v26 = vld [vmem:[%s714_s5] ss:$0 sm:$0xff]  ;;  %v521_v36 = vld [vmem:[#allocation4 + $0x10] sm:$0xff]   ;;  %v522_v37 = vld [vmem:[#allocation4 + $0x8] sm:$0xff]  }
  0x22   :  { %453 = vmatpush3.bf16.msra.mxu0 %v507_v2  ;;  %461 = vmatpush3.bf16.msra.mxu1 %v509_v8  ;;  %v519_v34 = vld [vmem:[#allocation4 + $0x20] sm:$0xff]   ;;  %vm426_vm3 = vmpackc.low %vm274_vm2, %vm274_vm2 }
  0x23   :  { %478 = vmatprep.subr.bf16.mxu0 %v584_v0  ;;  %462 = vmatprep.subr.bf16.mxu1 %v584_v0  ;;  %v523_v38 = vld [vmem:[#allocation4] sm:$0xff]  }
  0x24   :  { %v417_v62 = vld [vmem:[%s716_s7] ss:$0 sm:$0xff] }
  0x25   :  { %455 = vmatmul.mubr.msk.bf16.vlgmr.msra.gmra.mxu0 %vm87_vm1, %v61_v7 }
  0x26   :  { %494 = vmatprep.mubr.msk.bf16.mxu0 %vm585_vm0, %v584_v0  ;;  %463 = vmatpush3.bf16.msra.mxu1 %v510_v9 }
  0x27   :  { %464 = vmatprep.subr.bf16.mxu1 %v584_v0  ;;  %479 = vmatpush3.bf16.msra.mxu0 %v516_v25 }
  0x28   :  { %480 = vmatprep.subr.bf16.mxu0 %v584_v0 }
  0x2a   :  { %465 = vmatpush3.bf16.msra.mxu1 %v511_v10 }
  0x2b   :  { %466 = vmatprep.subr.bf16.mxu1 %v584_v0  ;;  %481 = vmatpush3.bf16.msra.mxu0 %v517_v29 }
  0x2c   :  { %482 = vmatprep.subr.bf16.mxu0 %v584_v0 }
  0x2e   :  { %467 = vmatpush3.bf16.msra.mxu1 %v512_v11 }
  0x2f   :  { %468 = vmatprep.subr.bf16.mxu1 %v584_v0  ;;  %483 = vmatpush3.bf16.msra.mxu0 %v518_v32 }
  0x30   :  { %484 = vmatprep.subr.bf16.mxu0 %v584_v0 }
  0x32   :  { %469 = vmatpush3.bf16.msra.mxu1 %v513_v12 }
  0x33   :  { %470 = vmatprep.subr.bf16.mxu1 %v584_v0  ;;  %485 = vmatpush3.bf16.msra.mxu0 %v519_v34 }
  0x34   :  { %486 = vmatprep.subr.bf16.mxu0 %v584_v0 }
  0x36   :  { %471 = vmatpush3.bf16.msra.mxu1 %v514_v13 }
  0x37   :  { %472 = vmatprep.subr.bf16.mxu1 %v584_v0  ;;  %487 = vmatpush3.bf16.msra.mxu0 %v520_v35 }
  0x38   :  { %488 = vmatprep.subr.bf16.mxu0 %v584_v0 }
  0x3a   :  { %473 = vmatpush3.bf16.msra.mxu1 %v515_v14 }
  0x3b   :  { %489 = vmatpush3.bf16.msra.mxu0 %v521_v36 }
  0x3c   :  { %490 = vmatprep.subr.bf16.mxu0 %v584_v0 }
  0x3f   :  { %491 = vmatpush3.bf16.msra.mxu0 %v522_v37 }
  0x40   :  { %492 = vmatprep.subr.bf16.mxu0 %v584_v0 }
  0x43   :  { %493 = vmatpush3.bf16.msra.mxu0 %v523_v38 }
  0x92   :  { %v133_v19 = vpop.permute.xlu0 %132 }
  0xe5   :  { %v125_v16 = vpop.f32.mrf.mxu0 }
  0xe6   :  { %v126_v17 = vadd.f32 %v402_v15, %v125_v16 }
  0xe7   :  { %v456_v18 = vpop.f32.mrf.mxu0 }
  0xe8   :  { %v131_v20 = vmax.f32 %v126_v17, 0.0 }
  0xe9   :  { %v128_v21 = vpop.f32.mrf.mxu0 }
  0xea   :  { %v134_v22 = vadd.f32 %v133_v19, %v131_v20 }
  0xeb   :  { %v457_v23 = vpop.f32.mrf.mxu0 }
  0xec   :  { %v135_v24 = vpack.c.bf16 %v134_v22, %v134_v22 }
  0xee   :  { %475 = vmatmul.mubr.bf16.vlgmr.msra.gmra.mxu1 %v135_v24 }
 0x1ae   :  { %v241_v27 = vpop.f32.mrf.mxu1 }
 0x1af   :  { %v242_v28 = vadd.f32 %v406_v26, %v241_v27 }
 0x1b0   :  { %v476_v30 = vpop.f32.mrf.mxu1 }
 0x1b1   :  { %263 = vrot.lane.b32.xlu1 %v242_v28, %s586_s27  ;;  %253 = vrot.lane.b32.xlu0 %v242_v28, %s587_s3  ;;  %v415_v39 = vmul.f32 -1.442695, %v242_v28 }
 0x1b2   :  { %v244_v31 = vpop.f32.mrf.mxu1 }
 0x1b3   :  { %524 = vpow2.f32 %v415_v39 }
 0x1b4   :  { %v477_v33 = vpop.f32.mrf.mxu1 }
 0x1b5   :  { %261 = vrot.lane.b32.xlu1 %v242_v28, %s581_s12 }
 0x1c0   :  { %v525_v40 = vpop.eup %524 }
 0x1c1   :  { %v250_v41 = vadd.f32 1.0, %v525_v40 }
 0x1c3   :  { %526 = vrcp.f32 %v250_v41 }
 0x1d0   :  { %v527_v45 = vpop.eup %526 }
 0x223   :  { %v254_v42 = vpop.permute.xlu0 %253  ;;  %v264_v44 = vpop.permute.xlu1 %263 }
 0x224   :  { %v416_v43 = vmul.f32 -1.442695, %v254_v42  ;;  %v265_v47 = vmul.f32 %v527_v45, %v264_v44 }
 0x226   :  { %528 = vpow2.f32 %v416_v43 }
 0x227   :  { %v262_v46 = vpop.permute.xlu1 %261 }
 0x228   :  { %v266_v50 = vadd.f32 %v265_v47, %v262_v46 }
 0x233   :  { %v529_v48 = vpop.eup %528 }
 0x234   :  { %v258_v49 = vadd.f32 1.0, %v529_v48 }
 0x236   :  { %530 = vrcp.f32 %v258_v49 }
 0x237   :  { %532 = vtanh.f32 %v266_v50 }
 0x243   :  { %v531_v53 = vpop.eup %530 }
 0x244   :  { %v268_v54 = vsub.f32 1.0, %v531_v53  ;;  %v533_v55 = vpop.eup %532  ;;  %v270_v57 = vmul.f32 %v531_v53, %v63_v5 }
 0x246   :  { %v269_v56 = vmul.f32 %v533_v55, %v268_v54 }
 0x248   :  { %v271_v58 = vadd.f32 %v270_v57, %v269_v56 }
 0x24a   :  { %v275_v59 = vsel %vm274_vm2, %v271_v58, 0.0  ;;  %v427_v60 = vpack.c.bf16 %v271_v58, %v271_v58 }
 0x24b   :  { %v276_v61 = vpack.c.bf16 %v275_v59, %v275_v59 }
 0x24c   :  { %495 = vmatmul.mubr.msk.bf16.vlgmr.msra.gmra.mxu0 %vm426_vm3, %v427_v60 }
 0x24d   :  { %389 = vst [vmem:[%s717_s8] sm:$0xf] %v276_v61 }
 0x30c   :  { %v382_v63 = vpop.f32.mrf.mxu0 }
 0x30d   :  { %v383_v0 = vadd.f32 %v417_v62, %v382_v63 }
 0x30e   :  { %v496_v1 = vpop.f32.mrf.mxu0 }
 0x30f   :  { %534 = vtanh.f32 %v383_v0 }
 0x310   :  { %v385_v2 = vpop.f32.mrf.mxu0 }
 0x312   :  { %v497_v3 = vpop.f32.mrf.mxu0 }
 0x31c   :  { %v535_v4 = vpop.eup %534 }
 0x31d   :  { %v390_v5 = vpack.c.bf16 %v535_v4, %v535_v4 }
 0x31f   :  { %391 = vst [vmem:[%s718_s9] sm:$0xf] %v390_v5 }
 0x320   :  { %400 = vsyncpa [#allocation3], 1 }
 0x321   :  { %401 = vsyncpa [#allocation5], 1 }

</bundles_post_ra>
